<compile_context>
chip_gen: v7x
topology: tpu7x:2x2x1
jax: 0.10.0
libtpu: 0.0.40
codegen_flags: <defaults>
</compile_context>

<pallas_src>
import jax
import jax.numpy as jnp
from jax.experimental import pallas as pl
from jax.experimental.pallas import tpu as pltpu


# ----------------------------------------------------------------------------
# helpers
# ----------------------------------------------------------------------------
def _round_up(x, m):
    return (x + m - 1) // m * m


def _pick_row_tile(n):
    # Largest MXU-friendly row tile that divides n; tiny problems use one block
    # (a full-extent block dim is always legal).
    for t in (256, 128):
        if n % t == 0:
            return t
    return n


def _pick_k_tile(n):
    for t in (512, 256, 128):
        if n % t == 0:
            return t
    return n


# ----------------------------------------------------------------------------
# Stage 1: fw = feature @ weight   (hoisted, computed once)
# ----------------------------------------------------------------------------
def _feat_weight_kernel(feat_ref, w_ref, fw_ref):
    fw_ref[...] = jnp.dot(
        feat_ref[...], w_ref[...], preferred_element_type=jnp.float32
    ).astype(fw_ref.dtype)


def _feature_weight(feature, w_p):
    N, F = feature.shape
    Lp = w_p.shape[1]
    tm = _pick_row_tile(N)
    grid = (N // tm,)

    cost = pl.CostEstimate(
        flops=2 * N * F * Lp,
        transcendentals=0,
        bytes_accessed=4 * (N * F + F * Lp + N * Lp),
    )
    return pl.pallas_call(
        _feat_weight_kernel,
        out_shape=jax.ShapeDtypeStruct((N, Lp), jnp.float32),
        grid=grid,
        in_specs=[
            pl.BlockSpec((tm, F), lambda i: (i, 0)),    # feature row tile
            pl.BlockSpec((F, Lp), lambda i: (0, 0)),    # full (padded) weight
        ],
        out_specs=pl.BlockSpec((tm, Lp), lambda i: (i, 0)),
        compiler_params=pltpu.CompilerParams(dimension_semantics=("parallel",)),
        cost_estimate=cost,
    )(feature, w_p)


# ----------------------------------------------------------------------------
# Stage 2: out = relu(adj @ fw + bias)   (row-tiled, K-tiled with accumulator)
# ----------------------------------------------------------------------------
def _gcn_kernel(adj_ref, fw_ref, b_ref, out_ref, acc_ref):
    k = pl.program_id(1)

    @pl.when(k == 0)
    def _init():
        acc_ref[...] = jnp.zeros_like(acc_ref)

    acc_ref[...] += jnp.dot(
        adj_ref[...], fw_ref[...], preferred_element_type=jnp.float32
    )

    @pl.when(k == pl.num_programs(1) - 1)
    def _finalize():
        out_ref[...] = jnp.maximum(acc_ref[...] + b_ref[...], 0.0).astype(
            out_ref.dtype
        )


def _adj_fw_bias_relu(adj, fw, b_p):
    N = adj.shape[0]
    Lp = fw.shape[1]
    tm = _pick_row_tile(N)
    tk = _pick_k_tile(N)
    grid = (N // tm, N // tk)

    cost = pl.CostEstimate(
        flops=2 * N * N * Lp + 2 * N * Lp,
        transcendentals=0,
        bytes_accessed=4 * (N * N + 3 * N * Lp),
    )
    return pl.pallas_call(
        _gcn_kernel,
        out_shape=jax.ShapeDtypeStruct((N, Lp), jnp.float32),
        grid=grid,
        in_specs=[
            pl.BlockSpec((tm, tk), lambda i, k: (i, k)),   # adj tile
            pl.BlockSpec((tk, Lp), lambda i, k: (k, 0)),   # fw K-chunk
            pl.BlockSpec((tm, Lp), lambda i, k: (i, 0)),   # bias row tile
        ],
        out_specs=pl.BlockSpec((tm, Lp), lambda i, k: (i, 0)),
        scratch_shapes=[pltpu.VMEM((tm, Lp), jnp.float32)],
        compiler_params=pltpu.CompilerParams(
            dimension_semantics=("parallel", "arbitrary"),
        ),
        cost_estimate=cost,
    )(adj, fw, b_p)


# ----------------------------------------------------------------------------
# Public wrapper: relu(adj @ feature @ weight + bias)
# ----------------------------------------------------------------------------
def graph_convolution(adj, feature, weight, bias):
    N = adj.shape[0]
    F = feature.shape[1]
    L = weight.shape[1]

    # Lane-dense padding of the latent dim (L -> multiple of 128). Padded lanes
    # are zeros everywhere, so relu(0 + 0) = 0 and the final slice removes them.
    Lp = _round_up(max(L, 128), 128)
    w_p = jnp.zeros((F, Lp), jnp.float32).at[:, :L].set(weight.astype(jnp.float32))
    b_p = jnp.zeros((N, Lp), jnp.float32).at[:, :L].set(bias.astype(jnp.float32))

    fw = _feature_weight(feature.astype(jnp.float32), w_p)          # (N, Lp)
    out_p = _adj_fw_bias_relu(adj.astype(jnp.float32), fw, b_p)     # (N, Lp)
    return out_p[:, :L]


def reference(adj, feature, weight, bias):
    return jnp.maximum(adj @ feature @ weight + bias, 0.0)


# ----------------------------------------------------------------------------
if __name__ == "__main__":
    # Module config: size1=(8, 16), size2=(8, 16), latent_factor_num=32
    size1 = (8, 16)
    size2 = (8, 16)
    latent_factor_num = 32
    N = size1[0] + size2[0]   # 16 nodes
    F = size1[1] + size2[1]   # 32 features
    L = latent_factor_num

    key = jax.random.PRNGKey(0)
    k_adj, k_feat, k_w, k_b = jax.random.split(key, 4)

    adj = jax.random.normal(k_adj, (N, N), dtype=jnp.float32)
    feature = jax.random.normal(k_feat, (N, F), dtype=jnp.float32)
    weight = jax.random.normal(k_w, (F, L), dtype=jnp.float32)     # torch.randn analog
    bias = jax.random.normal(k_b, (N, L), dtype=jnp.float32)

    out = jax.block_until_ready(graph_convolution(adj, feature, weight, bias))
    ref = reference(adj, feature, weight, bias)
    assert out.shape == (N, L)
    assert jnp.allclose(out, ref, atol=1e-3, rtol=1e-3), "mismatch vs reference (toy)"

    # Second check that exercises the multi-tile / K-accumulation / padding path.
    N2, F2, L2 = 384, 64, 96
    ka, kf, kw, kb = jax.random.split(jax.random.PRNGKey(1), 4)
    adj2 = jax.random.normal(ka, (N2, N2), dtype=jnp.float32)
    feat2 = jax.random.normal(kf, (N2, F2), dtype=jnp.float32)
    w2 = jax.random.normal(kw, (F2, L2), dtype=jnp.float32)
    b2 = jax.random.normal(kb, (N2, L2), dtype=jnp.float32)

    out2 = jax.block_until_ready(graph_convolution(adj2, feat2, w2, b2))
    ref2 = reference(adj2, feat2, w2, b2)
    assert out2.shape == (N2, L2)
    assert jnp.allclose(out2, ref2, atol=1e-2, rtol=1e-3), "mismatch vs reference (tiled)"

    print("KERNEL_OK")
</pallas_src>

<mosaic_0001>
module attributes {stable_mosaic.version = 11 : i64} {
  func.func @_feat_weight_kernel(%arg0: i32, %arg1: memref<16x32xf32, #tpu.memory_space<vmem>>, %arg2: memref<32x128xf32, #tpu.memory_space<vmem>>, %arg3: memref<16x128xf32, #tpu.memory_space<vmem>>) attributes {dimension_semantics = [#tpu.dimension_semantics<parallel>], iteration_bounds = array<i64: 1>, scalar_prefetch = 0 : i64, scratch_operands = 0 : i64, tpu.core_type = #tpu.core_type<tc>, window_params = [{transform_indices = @transform_0, window_bounds = array<i64: 16, 32>}, {pipeline_mode = #tpu.pipeline_mode<synchronous>, transform_indices = @transform_1, window_bounds = array<i64: 32, 128>}, {transform_indices = @transform_2, window_bounds = array<i64: 16, 128>}]} {
    %c0 = arith.constant 0 : index
    %c0_0 = arith.constant 0 : index
    %0 = vector.load %arg1[%c0, %c0_0] : memref<16x32xf32, #tpu.memory_space<vmem>>, vector<16x32xf32>
    %c0_1 = arith.constant 0 : index
    %c0_2 = arith.constant 0 : index
    %1 = vector.load %arg2[%c0_1, %c0_2] : memref<32x128xf32, #tpu.memory_space<vmem>>, vector<32x128xf32>
    %cst = arith.constant dense<0.000000e+00> : vector<16x128xf32>
    %2 = tpu.matmul %0, %1, %cst {dimension_numbers = #tpu.dot_dimension_numbers<[1], [0], [0], [1], [0, 0, 1, 1], [], []>} : vector<16x32xf32>, vector<32x128xf32>, vector<16x128xf32> -> vector<16x128xf32>
    %c0_3 = arith.constant 0 : index
    %c0_4 = arith.constant 0 : index
    %3 = vector.load %arg3[%c0_3, %c0_4] : memref<16x128xf32, #tpu.memory_space<vmem>>, vector<16x128xf32>
    tpu.vector_store %arg3[%c0_3, %c0_4], %2 {strides = array<i32>} : memref<16x128xf32, #tpu.memory_space<vmem>>, vector<16x128xf32>,
    return
  }
  func.func @transform_0(%arg0: i32) -> (i32, i32) {
    %c0_i32 = arith.constant 0 : i32
    %c0_i32_0 = arith.constant 0 : i32
    return %arg0, %c0_i32 : i32, i32
  }
  func.func @transform_1(%arg0: i32) -> (i32, i32) {
    %c0_i32 = arith.constant 0 : i32
    %c0_i32_0 = arith.constant 0 : i32
    %c0_i32_1 = arith.constant 0 : i32
    return %c0_i32, %c0_i32_0 : i32, i32
  }
  func.func @transform_2(%arg0: i32) -> (i32, i32) {
    %c0_i32 = arith.constant 0 : i32
    %c0_i32_0 = arith.constant 0 : i32
    return %arg0, %c0_i32 : i32, i32
  }
}

</mosaic_0001>

<bundles_post_ra>
// kernel: tpu_custom_call.1
= control target key start
LH: loop header
LB: loop body
LE: loop exit
PB: predicated region body
PF: predicated region fallthrough
CT: control target
= control target key end

     0   :  { %7 = vsyncpa [#allocation3], 0  ;;  %s317_s0 = inlined_call_operand.hbm [shape: f32[16,32], index: 0, kind: input, shape index: {}]   ;;  %s318_s1 = inlined_call_operand.hbm [shape: f32[32,128], index: 1, kind: input, shape index: {}]   ;;  %s319_s2 = inlined_call_operand.hbm [shape: f32[16,128], index: 2, kind: output, shape index: {}]  }
   0x1   :  { %8 = vsyncpa [#allocation6], 0 }
   0x2   :  { %9 = vsyncpa [#allocation4], 0  ;;  %s252_s9 = smov [#allocation2]   ;;  %s180_s13 = scalar_lea.hbm %s317_s0, 256 }
   0x3   :  { %s15_s10 = sshll.u32 %s252_s9, 4  ;;  %p181_p0 = scmp.ne.s32.totalorder %s317_s0, %s180_s13  ;;  %s16_s10 = int_to_ptr.vmem [resolvable:$true] %s15_s10 }
   0x4   :  { %p184_p1 = scmp.lt.u32.totalorder %s180_s13, %s317_s0 }
   0x6   :  { %p186_p2 = pnand %p184_p1, %p181_p0 }
   0x8   :  { %189 = shalt.err (!%p186_p2)
}
   0x9   :  { %s190_s18 = scalar_lea.vmem %s16_s10, 256  ;;  %p195_p4 = scmp.lt.s32.totalorder %s16_s10, %s16_s10 }
   0xa   :  { %p191_p3 = scmp.ne.s32.totalorder %s16_s10, %s190_s18  ;;  %p196_p5 = scmp.lt.s32.totalorder %s190_s18, %s190_s18 }
   0xc   :  { %p197_p6 = por %p196_p5, %p195_p4 }
   0xe   :  { %p198_p7 = pnand %p197_p6, %p191_p3 }
  0x10   :  { %201 = shalt.err (!%p198_p7)
}
  0x11   :  { %s253_s19 = smov 128   ;;  %s254_s20 = smov 8  }
  0x12   :  { %21 = dma.hbm_to_vmem [thread:$0]  %s317_s0, 256, %s16_s10, [#allocation3], %s253_s19, %s253_s19, %s254_s20  }
  0x13   :  { %s255_s23 = smov [#allocation5]   ;;  %s202_s27 = scalar_lea.hbm %s318_s1, 512 }
  0x14   :  { %s27_s24 = sshll.u32 %s255_s23, 4  ;;  %p203_p8 = scmp.ne.s32.totalorder %s318_s1, %s202_s27  ;;  %s28_s24 = int_to_ptr.vmem [resolvable:$true] %s27_s24 }
  0x15   :  { %p206_p9 = scmp.lt.u32.totalorder %s202_s27, %s318_s1 }
  0x17   :  { %p208_p10 = pnand %p206_p9, %p203_p8 }
  0x19   :  { %211 = shalt.err (!%p208_p10)
}
  0x1a   :  { %s212_s4 = scalar_lea.vmem %s28_s24, 512  ;;  %p217_p12 = scmp.lt.s32.totalorder %s28_s24, %s28_s24 }
  0x1b   :  { %p213_p11 = scmp.ne.s32.totalorder %s28_s24, %s212_s4  ;;  %p218_p13 = scmp.lt.s32.totalorder %s212_s4, %s212_s4 }
  0x1d   :  { %p219_p0 = por %p218_p13, %p217_p12 }
  0x1f   :  { %p220_p1 = pnand %p219_p0, %p213_p11 }
  0x21   :  { %223 = shalt.err (!%p220_p1)
}
  0x22   :  { %33 = dma.hbm_to_vmem [thread:$0]  %s318_s1, 512, %s28_s24, [#allocation6], %s253_s19, %s253_s19, %s254_s20  }
  0x23   :  { %246 = dma.done.wait [#allocation3], 256  }
  0x24   :  { %247 = vsyncadd [#allocation3], 4294967040 }
  0x25   :  { %248 = dma.done.wait [#allocation6], 512  }
  0x26   :  { %249 = vsyncadd [#allocation6], 4294966784  ;;  %vm46_vm0 = vcmask 261120   ;;  %v42_v0 = vld [vmem:[#allocation5] sm:$0xff]  ;;  %v43_v1 = vld [vmem:[#allocation5 + $0x8] sm:$0xff]  ;;  %s256_s1 = smov [#allocation7]  }
  0x27   :  { %v44_v2 = vld [vmem:[#allocation5 + $0x10] sm:$0xff]  ;;  %v167_v3 = vpack.c.bf16 %v43_v1, %v42_v0  ;;  %v45_v4 = vld [vmem:[#allocation5 + $0x18] sm:$0xff]  ;;  %s135_s6 = sshll.u32 %s256_s1, 4  ;;  %s136_s6 = int_to_ptr.vmem [resolvable:$true] %s135_s6 }
  0x28   :  { %v40_v5 = vld [vmem:[#allocation2] sm:$0xff]  ;;  %v171_v6 = vpack.c.bf16 %v45_v4, %v44_v2  ;;  %v41_v7 = vld [vmem:[#allocation2 + $0x8] sm:$0xff]  ;;  %s224_s7 = scalar_lea.vmem %s136_s6, 256  ;;  %p229_p3 = scmp.lt.s32.totalorder %s136_s6, %s136_s6 }
  0x29   :  { %164 = vmatprep.mubr.msk.f32.mxu0 %vm46_vm0, %v40_v5  ;;  %168 = vmatprep.subr.bf16.mxu0 %v167_v3  ;;  %p225_p2 = scmp.ne.s32.totalorder %s136_s6, %s224_s7  ;;  %p230_p4 = scmp.lt.s32.totalorder %s224_s7, %s224_s7 }
  0x2a   :  { %170 = vmatpush3.bf16.msra.mxu0 %v167_v3 }
  0x2b   :  { %172 = vmatprep.subr.bf16.mxu0 %v171_v6  ;;  %p231_p5 = por %p230_p4, %p229_p3 }
  0x2d   :  { %p232_p6 = pnand %p231_p5, %p225_p2 }
  0x2e   :  { %174 = vmatpush3.bf16.msra.mxu0 %v171_v6 }
  0x31   :  { %165 = vmatmul.mubr.msk.f32.vlgmr.msra.gmra.mrb[0].mxu0 %vm46_vm0, %v41_v7 }
 0x104   :  { %v166_v8 = vpop.f32.mrb[0].mxu0 }
 0x105   :  { %129 = vst [vmem:[#allocation7 + $0x8] sm:$0xff] %v166_v8  ;;  %v119_v9 = vpop.f32.mrb[1].mxu0 }
 0x106   :  { %128 = vst [vmem:[#allocation7] sm:$0xff] %v119_v9 }
 0x107   :  { %235 = shalt.err (!%p232_p6)
}
 0x108   :  { %s236_s10 = scalar_lea.hbm %s319_s2, 256 }
 0x109   :  { %p237_p7 = scmp.ne.s32.totalorder %s319_s2, %s236_s10  ;;  %p240_p8 = scmp.lt.u32.totalorder %s236_s10, %s319_s2 }
 0x10b   :  { %p242_p9 = pnand %p240_p8, %p237_p7 }
 0x10d   :  { %245 = shalt.err (!%p242_p9)
}
 0x10e   :  { %141 = dma.vmem_to_hbm [thread:$0]  %s136_s6, 256, %s319_s2, [#allocation4], %s253_s19, %s253_s19, %s254_s20  }
 0x10f   :  { %250 = dma.done.wait [#allocation4], 256  }
 0x110   :  { %251 = vsyncadd [#allocation4], 4294967040 }
 0x111   :  { %145 = vsyncpa [#allocation3], 1 }
 0x112   :  { %146 = vsyncpa [#allocation6], 1 }
 0x113   :  { %147 = vsyncpa [#allocation4], 1 }

</bundles_post_ra>
